<compile_context>
chip_gen: v7x
topology: tpu7x:2x2x1
jax: 0.10.0
libtpu: 0.0.40
codegen_flags: <defaults>
</compile_context>

<pallas_src>
import functools

import jax
import jax.numpy as jnp
from jax import lax
from jax.experimental import pallas as pl
from jax.experimental.pallas import tpu as pltpu


_MXU_MIN_C = 128       # below this a (T,C)@(C,1) dot is not worth the vex traffic
_MXU_MAX_C = 2048      # above this the per-dot push count dwarfs the XLU reduce
_MAX_TILE_ROWS = 8192  # sanity cap on the row tile (VMEM budget is the real limit)


def _int_pow(x, e):
    """x**e for a small non-negative integer e via repeated multiplication (VPU)."""
    result = None
    base = x
    while e > 0:
        if e & 1:
            result = base if result is None else result * base
        e >>= 1
        if e:
            base = base * base
    if result is None:  # e == 0
        return jnp.ones_like(x)
    return result


def _vmem_limits():
    """Per-generation scoped-VMEM limit and the budget used for tile sizing."""
    try:
        cap = int(pltpu.get_tpu_info().vmem_capacity_bytes)
    except Exception:  # pragma: no cover - conservative fallback off-TPU
        cap = 64 * 1024 * 1024
    # ~3/4 of physical: 128 MiB chips (v5e/v6e) -> 96 MiB, 64 MiB (v7x) -> 48 MiB.
    limit = (cap * 3) // 4
    limit = max(32 * 1024 * 1024, min(limit, 96 * 1024 * 1024))
    budget = (limit * 3) // 4          # headroom for targets/output buffers & spills
    return limit, budget


def _pick_tile_n(n, c, itemsize, budget, requested=None):
    """Row-tile size: sublane-aligned for the input dtype, VMEM-budgeted."""
    sub = {4: 8, 2: 16, 1: 32}.get(itemsize, 8)
    n_pad = ((n + sub - 1) // sub) * sub
    if requested is not None:
        tile = ((int(requested) + sub - 1) // sub) * sub
    else:
        # double-buffered native-dtype logits tile + ~4 live (T, C) f32 temps
        per_row = c * (2 * itemsize + 4 * 4) + 64
        tile = budget // per_row
        tile = max(sub, min(_MAX_TILE_ROWS, (tile // sub) * sub))
    return int(min(tile, n_pad))


def _focal_loss_kernel(*refs, gamma, reduction, n_total, tile_n,
                       tiles_per_part, use_mxu, has_alpha):
    if has_alpha:
        logits_ref, targets_ref, alpha_ref = refs[0], refs[1], refs[2]
    else:
        logits_ref, targets_ref = refs[0], refs[1]
        alpha_ref = None
    out_ref = refs[-1]

    if reduction in ("mean", "sum"):
        part = pl.program_id(0)
        step = pl.program_id(1)
        gid = part * tiles_per_part + step        # global (unclamped) tile id
    else:
        step = pl.program_id(0)
        gid = step

    logits = logits_ref[...].astype(jnp.float32)  # (T, C) in-register upcast
    targets = targets_ref[...]                    # (T, 1) int32
    t, c = logits.shape

    # Numerically stable log-sum-exp; the row max cancels out of ce exactly.
    row_max = jnp.max(logits, axis=-1, keepdims=True)       # (T, 1)  XLU
    shifted = logits - row_max                               # (T, C), <= 0
    es = jnp.exp(shifted)                                    # (T, C)  EUP

    class_ids = lax.broadcasted_iota(jnp.int32, (t, c), 1)
    onehot = class_ids == targets                            # (T, C) bool

    if use_mxu:
        # Offload only the big inexact reduction to the otherwise-idle MXU.
        ones_col = jnp.ones((c, 1), jnp.float32)
        sum_exp = jnp.dot(es, ones_col, preferred_element_type=jnp.float32)
    else:
        sum_exp = jnp.sum(es, axis=-1, keepdims=True)

    # Exact selections via where + lane reduce (no MXU bf16 truncation).
    tgt_shift = jnp.sum(jnp.where(onehot, shifted, 0.0), axis=-1, keepdims=True)

    ce = jnp.log(sum_exp) - tgt_shift                        # (T, 1)
    ce = jnp.maximum(ce, 0.0)          # guard tiny negative rounding

    pt = jnp.exp(-ce)
    one_minus_pt = jnp.maximum(1.0 - pt, 0.0)
    g = float(gamma)
    if g == int(g) and 0 <= int(g) <= 16:
        w = _int_pow(one_minus_pt, int(g))                   # VPU muls, EUP free
    else:
        w = one_minus_pt ** g                                # general fallback

    focal = w * ce
    if has_alpha:
        alpha_row = alpha_ref[...].astype(jnp.float32)       # (1, C)
        alpha_t = jnp.sum(jnp.where(onehot, alpha_row, 0.0), axis=-1, keepdims=True)
        focal = alpha_t * focal                              # (T, 1)

    # Mask padded rows of the last partial tile and fully-out-of-range tiles
    # of an uneven two-part split (their data was a clamped duplicate read).
    row_ids = gid * tile_n + lax.broadcasted_iota(jnp.int32, (t, 1), 0)
    focal = jnp.where(row_ids < n_total, focal, 0.0)

    if reduction in ("mean", "sum"):
        @pl.when(step == 0)
        def _init():
            out_ref[...] = jnp.zeros_like(out_ref)

        out_ref[...] += jnp.sum(focal, keepdims=True)        # (1, 1) per-part sum
    else:  # 'none'
        out_ref[...] = focal


def multi_class_focal_loss(inputs, targets, alpha=None, gamma=2,
                           reduction="mean", tile_n=None):
    """inputs: (N, C) logits (any float dtype); targets: (N,) integer labels."""
    n, c = inputs.shape
    itemsize = jnp.dtype(inputs.dtype).itemsize
    vmem_limit, vmem_budget = _vmem_limits()
    tile = _pick_tile_n(n, c, itemsize, vmem_budget, tile_n)
    num_tiles = -(-n // tile)

    use_mxu = _MXU_MIN_C <= c <= _MXU_MAX_C
    has_alpha = alpha is not None

    targets2d = targets.astype(jnp.int32).reshape(n, 1)
    args = [inputs, targets2d]
    if has_alpha:
        args.append(jnp.asarray(alpha, dtype=jnp.float32).reshape(1, c))

    if reduction in ("mean", "sum"):
        # Split tiles into 2 independent partial sums; the leading "parallel"
        # axis core-shards on v7x and is free elsewhere.
        n_parts = 2 if num_tiles >= 2 else 1
        tiles_per_part = -(-num_tiles // n_parts)
        last_block = num_tiles - 1

        def row_map(p, i):
            return (jnp.minimum(p * tiles_per_part + i, last_block), 0)

        grid = (n_parts, tiles_per_part)
        dims = ("parallel", "arbitrary")
        in_specs = [pl.BlockSpec((tile, c), row_map),
                    pl.BlockSpec((tile, 1), row_map)]
        if has_alpha:
            in_specs.append(pl.BlockSpec((1, c), lambda p, i: (0, 0)))
        out_shape = jax.ShapeDtypeStruct((n_parts, 1), jnp.float32)
        out_specs = pl.BlockSpec((1, 1), lambda p, i: (p, 0))   # resident per-part acc
    elif reduction == "none":
        tiles_per_part = 0  # unused
        grid = (num_tiles,)
        dims = ("parallel",)
        in_specs = [pl.BlockSpec((tile, c), lambda i: (i, 0)),
                    pl.BlockSpec((tile, 1), lambda i: (i, 0))]
        if has_alpha:
            in_specs.append(pl.BlockSpec((1, c), lambda i: (0, 0)))
        out_shape = jax.ShapeDtypeStruct((num_tiles * tile, 1), jnp.float32)
        out_specs = pl.BlockSpec((tile, 1), lambda i: (i, 0))
    else:
        raise ValueError(f"unknown reduction: {reduction!r}")

    kernel = functools.partial(
        _focal_loss_kernel, gamma=float(gamma), reduction=reduction,
        n_total=n, tile_n=tile, tiles_per_part=tiles_per_part,
        use_mxu=use_mxu, has_alpha=has_alpha)

    out_bytes = 4 * (2 if reduction in ("mean", "sum") else n)
    cost = pl.CostEstimate(
        flops=int(8 * n * c),
        transcendentals=int(n * c + 2 * n),
        bytes_accessed=int(n * c * itemsize + n * 4
                           + (c * 4 if has_alpha else 0) + out_bytes),
    )

    result = pl.pallas_call(
        kernel,
        out_shape=out_shape,
        grid=grid,
        in_specs=in_specs,
        out_specs=out_specs,
        compiler_params=pltpu.CompilerParams(
            dimension_semantics=dims,
            vmem_limit_bytes=vmem_limit,
        ),
        cost_estimate=cost,
    )(*args)

    if reduction == "mean":
        return jnp.sum(result) / jnp.float32(n)
    if reduction == "sum":
        return jnp.sum(result)
    # TODO(synk): a lane-dense (1, tile) 'none' output layout would avoid masked
    # vst.msk partial stores, but output bytes are ~1/C of the logits read, so
    # only do it if a bundle dump shows the store slot binding.
    # TODO(synk): a packed small-C path (k=128//C rows per lane-row with
    # segmented reductions) would recover lane efficiency for C << 128.
    return result[:n, 0]


def _reference(inputs, targets, alpha=None, gamma=2, reduction="mean"):
    logits = inputs.astype(jnp.float32)
    logp = jax.nn.log_softmax(logits, axis=-1)
    ce = -jnp.take_along_axis(logp, targets[:, None].astype(jnp.int32), axis=-1)[:, 0]
    a = jnp.ones_like(ce) if alpha is None else jnp.asarray(alpha, jnp.float32)[targets]
    pt = jnp.exp(-ce)
    focal = a * (1.0 - pt) ** gamma * ce
    if reduction == "mean":
        return focal.mean()
    if reduction == "sum":
        return focal.sum()
    return focal


if __name__ == "__main__":
    key = jax.random.PRNGKey(0)
    k1, k2, k3, k4, k5 = jax.random.split(key, 5)

    # --- small f32 case: single tile, XLU-reduction path, alpha=None fast path
    N1, C1 = 8, 16
    logits1 = jax.random.normal(k1, (N1, C1), dtype=jnp.float32) * 2.0
    targets1 = jax.random.randint(k2, (N1,), 0, C1, dtype=jnp.int32)

    loss1 = multi_class_focal_loss(logits1, targets1, alpha=None, gamma=2)
    jax.block_until_ready(loss1)
    ref1 = _reference(logits1, targets1, alpha=None, gamma=2)
    assert jnp.allclose(loss1, ref1, atol=1e-5, rtol=1e-5), (loss1, ref1)

    per1 = multi_class_focal_loss(logits1, targets1, alpha=None, gamma=2,
                                  reduction="none")
    jax.block_until_ready(per1)
    refp1 = _reference(logits1, targets1, alpha=None, gamma=2, reduction="none")
    assert jnp.allclose(per1, refp1, atol=1e-5, rtol=1e-5), (per1, refp1)

    sum1 = multi_class_focal_loss(logits1, targets1, alpha=None, gamma=2,
                                  reduction="sum")
    jax.block_until_ready(sum1)
    refs1 = _reference(logits1, targets1, alpha=None, gamma=2, reduction="sum")
    assert jnp.allclose(sum1, refs1, atol=1e-5, rtol=1e-5), (sum1, refs1)

    # --- bf16 case: multi-tile, two-part core-split reduction with a clamped
    # out-of-range tile, padded last tile, alpha weights, MXU sum_exp offload
    # (C >= 128), no wrapper upcast --------------------------------------------
    N2, C2 = 40, 256
    logits2 = (jax.random.normal(k3, (N2, C2), dtype=jnp.float32) * 2.0
               ).astype(jnp.bfloat16)
    targets2 = jax.random.randint(k4, (N2,), 0, C2, dtype=jnp.int32)
    alpha2 = jax.random.uniform(k5, (C2,), dtype=jnp.float32,
                                minval=0.25, maxval=1.0)

    loss2 = multi_class_focal_loss(logits2, targets2, alpha=alpha2, gamma=2,
                                   tile_n=16)
    jax.block_until_ready(loss2)
    ref2 = _reference(logits2, targets2, alpha=alpha2, gamma=2)
    # Only sum_exp goes through the MXU at default matmul precision now, so the
    # tolerance is much tighter than the previous 2e-2.
    assert jnp.allclose(loss2, ref2, atol=1e-2, rtol=1e-2), (loss2, ref2)

    print("KERNEL_OK")
</pallas_src>

<mosaic_0001>
module attributes {stable_mosaic.version = 11 : i64} {
  func.func @_focal_loss_kernel(%arg0: i32, %arg1: i32, %arg2: memref<8x16xf32, #tpu.memory_space<vmem>>, %arg3: memref<8x1xi32, #tpu.memory_space<vmem>>, %arg4: memref<1x1xf32, #tpu.memory_space<vmem>>) attributes {dimension_semantics = [#tpu.dimension_semantics<parallel>, #tpu.dimension_semantics<arbitrary>], iteration_bounds = array<i64: 1, 1>, scalar_prefetch = 0 : i64, scratch_operands = 0 : i64, tpu.core_type = #tpu.core_type<tc>, window_params = [{transform_indices = @transform_0, window_bounds = array<i64: 8, 16>}, {transform_indices = @transform_1, window_bounds = array<i64: 8, 1>}, {transform_indices = @transform_2, window_bounds = array<i64: 1, 1>}]} {
    %c1_i32 = arith.constant 1 : i32
    %0 = arith.muli %arg0, %c1_i32 : i32
    %1 = arith.addi %0, %arg1 : i32
    %c0 = arith.constant 0 : index
    %c0_0 = arith.constant 0 : index
    %2 = vector.load %arg2[%c0, %c0_0] : memref<8x16xf32, #tpu.memory_space<vmem>>, vector<8x16xf32>
    %c0_1 = arith.constant 0 : index
    %c0_2 = arith.constant 0 : index
    %3 = vector.load %arg3[%c0_1, %c0_2] : memref<8x1xi32, #tpu.memory_space<vmem>>, vector<8x1xi32>
    %cst = arith.constant dense<0xFF800000> : vector<8xf32>
    %4 = vector.multi_reduction <maximumf>, %2, %cst [1] : vector<8x16xf32> to vector<8xf32>
    %5 = vector.shape_cast %4 : vector<8xf32> to vector<8x1xf32>
    %6 = vector.broadcast %5 : vector<8x1xf32> to vector<8x16xf32>
    %7 = arith.subf %2, %6 : vector<8x16xf32>
    %8 = math.exp %7 : vector<8x16xf32>
    %9 = tpu.iota {dimensions = array<i32: 1>} : vector<8x16xi32>
    %10 = vector.broadcast %3 : vector<8x1xi32> to vector<8x16xi32>
    %11 = arith.cmpi eq, %9, %10 : vector<8x16xi32>
    %cst_3 = arith.constant dense<0.000000e+00> : vector<8xf32>
    %12 = vector.multi_reduction <add>, %8, %cst_3 [1] : vector<8x16xf32> to vector<8xf32>
    %13 = vector.shape_cast %12 : vector<8xf32> to vector<8x1xf32>
    %cst_4 = arith.constant 0.000000e+00 : f32
    %14 = vector.broadcast %cst_4 : f32 to vector<8x16xf32>
    %15 = arith.select %11, %7, %14 : vector<8x16xi1>, vector<8x16xf32>
    %cst_5 = arith.constant dense<0.000000e+00> : vector<8xf32>
    %16 = vector.multi_reduction <add>, %15, %cst_5 [1] : vector<8x16xf32> to vector<8xf32>
    %17 = vector.shape_cast %16 : vector<8xf32> to vector<8x1xf32>
    %18 = math.log %13 : vector<8x1xf32>
    %19 = arith.subf %18, %17 : vector<8x1xf32>
    %cst_6 = arith.constant 0.000000e+00 : f32
    %20 = vector.broadcast %cst_6 : f32 to vector<8x1xf32>
    %21 = arith.maximumf %19, %20 : vector<8x1xf32>
    %cst_7 = arith.constant 0.000000e+00 : f32
    %22 = vector.broadcast %cst_7 : f32 to vector<8x1xf32>
    %23 = arith.subf %22, %21 : vector<8x1xf32>
    %24 = math.exp %23 : vector<8x1xf32>
    %cst_8 = arith.constant 1.000000e+00 : f32
    %25 = vector.broadcast %cst_8 : f32 to vector<8x1xf32>
    %26 = arith.subf %25, %24 : vector<8x1xf32>
    %cst_9 = arith.constant 0.000000e+00 : f32
    %27 = vector.broadcast %cst_9 : f32 to vector<8x1xf32>
    %28 = arith.maximumf %26, %27 : vector<8x1xf32>
    %29 = arith.mulf %28, %28 : vector<8x1xf32>
    %30 = arith.mulf %29, %21 : vector<8x1xf32>
    %c8_i32 = arith.constant 8 : i32
    %31 = arith.muli %1, %c8_i32 : i32
    %32 = tpu.iota {dimensions = array<i32: 0>} : vector<8x1xi32>
    %33 = vector.broadcast %31 : i32 to vector<8x1xi32>
    %34 = arith.addi %33, %32 : vector<8x1xi32>
    %c8_i32_10 = arith.constant 8 : i32
    %35 = vector.broadcast %c8_i32_10 : i32 to vector<8x1xi32>
    %36 = arith.cmpi slt, %34, %35 : vector<8x1xi32>
    %cst_11 = arith.constant 0.000000e+00 : f32
    %37 = vector.broadcast %cst_11 : f32 to vector<8x1xf32>
    %38 = arith.select %36, %30, %37 : vector<8x1xi1>, vector<8x1xf32>
    %c0_i32 = arith.constant 0 : i32
    %39 = arith.cmpi eq, %arg1, %c0_i32 : i32
    %40 = arith.extui %39 : i1 to i32
    %c0_i32_12 = arith.constant 0 : i32
    %41 = arith.cmpi ne, %40, %c0_i32_12 : i32
    scf.if %41 {
      %cst_18 = arith.constant 0.000000e+00 : f32
      %50 = vector.broadcast %cst_18 : f32 to vector<1x1xf32>
      %c0_19 = arith.constant 0 : index
      %c0_20 = arith.constant 0 : index
      %51 = vector.load %arg4[%c0_19, %c0_20] : memref<1x1xf32, #tpu.memory_space<vmem>>, vector<1x1xf32>
      tpu.vector_store %arg4[%c0_19, %c0_20], %50 {strides = array<i32>} : memref<1x1xf32, #tpu.memory_space<vmem>>, vector<1x1xf32>,
    } else {
    }
    %c0_13 = arith.constant 0 : index
    %c0_14 = arith.constant 0 : index
    %42 = vector.load %arg4[%c0_13, %c0_14] : memref<1x1xf32, #tpu.memory_space<vmem>>, vector<1x1xf32>
    %43 = vector.shape_cast %38 : vector<8x1xf32> to vector<1x8x1xf32>
    %cst_15 = arith.constant dense<0.000000e+00> : vector<1xf32>
    %44 = vector.multi_reduction <add>, %43, %cst_15 [1, 2] : vector<1x8x1xf32> to vector<1xf32>
    %45 = vector.shape_cast %44 : vector<1xf32> to vector<1x1x1xf32>
    %46 = vector.extract %45[0, 0, 0] : f32 from vector<1x1x1xf32>
    %47 = vector.broadcast %46 : f32 to vector<1x1xf32>
    %48 = arith.addf %42, %47 : vector<1x1xf32>
    %c0_16 = arith.constant 0 : index
    %c0_17 = arith.constant 0 : index
    %49 = vector.load %arg4[%c0_16, %c0_17] : memref<1x1xf32, #tpu.memory_space<vmem>>, vector<1x1xf32>
    tpu.vector_store %arg4[%c0_16, %c0_17], %48 {strides = array<i32>} : memref<1x1xf32, #tpu.memory_space<vmem>>, vector<1x1xf32>,
    return
  }
  func.func @transform_0(%arg0: i32, %arg1: i32) -> (i32, i32) {
    %c1_i32 = arith.constant 1 : i32
    %0 = arith.muli %arg0, %c1_i32 : i32
    %1 = arith.addi %0, %arg1 : i32
    %c0_i32 = arith.constant 0 : i32
    %2 = arith.minsi %1, %c0_i32 : i32
    %c0_i32_0 = arith.constant 0 : i32
    %c0_i32_1 = arith.constant 0 : i32
    return %2, %c0_i32_0 : i32, i32
  }
  func.func @transform_1(%arg0: i32, %arg1: i32) -> (i32, i32) {
    %c1_i32 = arith.constant 1 : i32
    %0 = arith.muli %arg0, %c1_i32 : i32
    %1 = arith.addi %0, %arg1 : i32
    %c0_i32 = arith.constant 0 : i32
    %2 = arith.minsi %1, %c0_i32 : i32
    %c0_i32_0 = arith.constant 0 : i32
    %c0_i32_1 = arith.constant 0 : i32
    return %2, %c0_i32_0 : i32, i32
  }
  func.func @transform_2(%arg0: i32, %arg1: i32) -> (i32, i32) {
    %c0_i32 = arith.constant 0 : i32
    %c0_i32_0 = arith.constant 0 : i32
    return %arg0, %c0_i32 : i32, i32
  }
}

</mosaic_0001>

<bundles_post_ra>
// kernel: tpu_custom_call.1
= control target key start
LH: loop header
LB: loop body
LE: loop exit
PB: predicated region body
PF: predicated region fallthrough
CT: control target
= control target key end

     0   :  { %vm69_vm0 = vcmask 130048   ;;  %s232_s0 = inlined_call_operand.vmem [shape: f32[8,16], index: 0, kind: input, shape index: {}]   ;;  %s233_s1 = inlined_call_operand.vmem [shape: s32[8,1], index: 1, kind: input, shape index: {}]   ;;  %s234_s2 = inlined_call_operand.hbm [shape: f32[1,1], index: 2, kind: output, shape index: {}]  }
   0x1   :  { %v67_v0 = vld [vmem:[%s232_s0] sm:$0xff] }
   0x2   :  { %7 = vsyncpa [#allocation3], 0  ;;  %v70_v1 = vsel %vm69_vm0, %v67_v0, -inf  ;;  %v191_v2 = vmov 0   ;;  %v68_v3 = vld [vmem:[%s233_s1] sm:$0xff]  ;;  %v76_v7 = vlaneseq  ;;  %vm114_vm2 = vcmask 7168  }
   0x3   :  { %160 = vset.pattern.permute.xlu0 %v191_v2  ;;  %vm111_vm3 = vcmask 0   ;;  %v192_v28 = vmov 0.0   ;;  %s193_s0 = smov [#allocation2]  }
   0x4   :  { %71 = vmax.xlane.f32.xlu0 %v70_v1  ;;  %v77_v8 = vand.u32 127, %v76_v7  ;;  %112 = vst.msk [vmem:[#allocation2] sm:$0x1] %vm111_vm3, %v192_v28  ;;  %s135_s1 = sshll.u32 %s193_s0, 4  ;;  %s136_s1 = int_to_ptr.vmem [resolvable:$true] %s135_s1 }
   0x5   :  { %s167_s14 = scalar_lea.vmem %s136_s1, 16  ;;  %s171_s15 = scalar_lea.vmem %s136_s1, 32 }
   0x6   :  { %p168_p0 = scmp.ne.s32.totalorder %s136_s1, %s167_s14  ;;  %p172_p1 = scmp.lt.s32.totalorder %s136_s1, %s136_s1 }
   0x7   :  { %p173_p2 = scmp.lt.s32.totalorder %s171_s15, %s167_s14 }
   0x9   :  { %p174_p3 = por %p173_p2, %p172_p1 }
   0xb   :  { %v113_v36 = vld [vmem:[#allocation2] sm:$0x1]  ;;  %p175_p4 = pnand %p174_p3, %p168_p0 }
  0x1a   :  { %79 = vperm.xlu0 %160, %v68_v3  }
  0x91   :  { %v72_v4 = vpop.xlane.xlu0 %71 }
  0x92   :  { %v73_v5 = vsub.f32 %v67_v0, %v72_v4 }
  0x94   :  { %v74_v6 = vmul.f32 1.442695, %v73_v5 }
  0x96   :  { %161 = vpow2.f32 %v74_v6 }
  0x99   :  { %v80_v9 = vpop.permute.xlu0 %79 }
  0x9a   :  { %vm81_vm1 = vcmp.eq.s32.totalorder %v77_v8, %v80_v9 }
  0x9b   :  { %v85_v12 = vsel %vm81_vm1, %v73_v5, 0.0 }
  0x9c   :  { %v86_v13 = vsel %vm69_vm0, %v85_v12, 0.0 }
  0xa0   :  { %v162_v10 = vpop.eup %161 }
  0xa1   :  { %v82_v11 = vsel %vm69_vm0, %v162_v10, 0.0 }
  0xa2   :  { %83 = vadd.xlane.f32.xlu1 %v82_v11 }
  0xa6   :  { %87 = vadd.xlane.f32.xlu1 %v86_v13 }
 0x12f   :  { %v84_v14 = vpop.xlane.xlu1 %83 }
 0x130   :  { %163 = vlog2.f32 %v84_v14 }
 0x133   :  { %v88_v17 = vpop.xlane.xlu1 %87 }
 0x13a   :  { %v164_v15 = vpop.eup %163 }
 0x13b   :  { %v90_v16 = vmul.f32 0.6931472, %v164_v15 }
 0x13d   :  { %v91_v18 = vsub.f32 %v90_v16, %v88_v17 }
 0x13f   :  { %v92_v19 = vmax.f32 %v91_v18, 0.0 }
 0x141   :  { %v93_v20 = vsub.f32 0.0, %v92_v19 }
 0x143   :  { %v94_v21 = vmul.f32 1.442695, %v93_v20 }
 0x145   :  { %165 = vpow2.f32 %v94_v21 }
 0x14f   :  { %v166_v22 = vpop.eup %165 }
 0x150   :  { %v96_v23 = vsub.f32 1.0, %v166_v22 }
 0x152   :  { %v97_v24 = vmax.f32 %v96_v23, 0.0 }
 0x154   :  { %v98_v25 = vmul.f32 %v97_v24, %v97_v24 }
 0x156   :  { %v99_v26 = vmul.f32 %v98_v25, %v92_v19 }
 0x158   :  { %v115_v27 = vsel %vm114_vm2, %v99_v26, 0.0 }
 0x159   :  { %116 = vadd.xlane.f32.xlu1 %v115_v27 }
 0x1e6   :  { %v117_v29 = vpop.xlane.xlu1 %116 }
 0x1e7   :  { %v118_v30 = vrot.slane %v117_v29, 4 }
 0x1e9   :  { %v119_v31 = vadd.f32 %v118_v30, %v117_v29 }
 0x1eb   :  { %v120_v32 = vrot.slane %v119_v31, 2 }
 0x1ed   :  { %v121_v33 = vadd.f32 %v120_v32, %v119_v31 }
 0x1ef   :  { %v122_v34 = vrot.slane %v121_v33, 1 }
 0x1f1   :  { %v123_v35 = vadd.f32 %v122_v34, %v121_v33 }
 0x1f3   :  { %155 = vpush %v123_v35 }
 0x224   :  { %s156_s13 = spop %155 }
 0x225   :  { %v125_v37 = vstv %s156_s13 }
 0x226   :  { %v126_v38 = vadd.f32 %v125_v37, %v113_v36 }
 0x228   :  { %128 = vst.msk [vmem:[#allocation2] sm:$0x1] %vm111_vm3, %v126_v38 }
 0x229   :  { %178 = shalt.err (!%p175_p4)
}
 0x22a   :  { %s179_s18 = scalar_lea.hbm %s234_s2, 16 }
 0x22b   :  { %p180_p5 = scmp.ne.s32.totalorder %s234_s2, %s179_s18  ;;  %p183_p6 = scmp.lt.u32.totalorder %s179_s18, %s234_s2 }
 0x22d   :  { %p185_p7 = pnand %p183_p6, %p180_p5 }
 0x22f   :  { %188 = shalt.err (!%p185_p7)
}
 0x230   :  { %138 = dma.vmem_to_hbm [thread:$0]  %s136_s1, 16, %s234_s2, [#allocation3]  }
 0x231   :  { %189 = dma.done.wait [#allocation3], 16  }
 0x232   :  { %190 = vsyncadd [#allocation3], 4294967280 }
 0x233   :  { %142 = vsyncpa [#allocation3], 1 }

</bundles_post_ra>
